<compile_context>
chip_gen: v6e
topology: v6e:2x2x1
jax: 0.10.0
libtpu: 0.0.40
codegen_flags: <defaults>
</compile_context>

<pallas_src>
import jax
import jax.numpy as jnp
from jax import lax
from jax.experimental import pallas as pl
from jax.experimental.pallas import tpu as pltpu


def _round_up(x, m):
    return (x + m - 1) // m * m


# ----------------------------- Pass 1 ----------------------------------------
def _linear_stats_kernel(x_ref, wt_ref, h_ref, psum_ref, psumsq_ref):
    """h = x @ W^T per batch tile (W pre-transposed) + per-tile partial stats.

    Partial sums are folded onto 8 sublanes -> (8, n_out_p) output blocks, so
    each tile's stats output is a native (8,128) tile and the batch axis can be
    marked "parallel"; the tiny cross-tile reduction happens in the wrapper.
    """
    h = lax.dot_general(
        x_ref[...], wt_ref[...],
        dimension_numbers=(((1,), (0,)), ((), ())),
        preferred_element_type=jnp.float32,
    )
    h_ref[...] = h.astype(h_ref.dtype)

    rows = h.shape[0]
    hr = h.reshape(rows // 8, 8, h.shape[1])          # tile-boundary split: no relayout
    psum_ref[...] = jnp.sum(hr, axis=0)
    psumsq_ref[...] = jnp.sum(hr * hr, axis=0)


# ----------------------------- Pass 2 ----------------------------------------
def _bn_relu_kernel(h_ref, scale_ref, shift_ref, y_ref):
    """y = ReLU(h * scale + shift) with scale/shift prefolded at (1, n_out_p)."""
    h = h_ref[...].astype(jnp.float32)
    y_ref[...] = jnp.maximum(h * scale_ref[...] + shift_ref[...], 0.0).astype(y_ref.dtype)


def autoencoder_encode(x, weight, bias=None, gamma=None, beta=None, *,
                       block_rows=256, block_rows_bn=1024, eps=1e-5,
                       matmul_dtype=jnp.bfloat16, h_dtype=jnp.bfloat16):
    """Encode path of AutoEncoder.forward.

    x: (N, n_in). weight: (n_out, n_in) as in nn.Linear. bias accepted for API
    parity but unused (cancels exactly under BatchNorm mean subtraction).
    Returns (N, n_out) in x.dtype.
    """
    del bias  # mathematically exact: cancels under BatchNorm mean subtraction
    n, n_in = x.shape
    n_out = weight.shape[0]
    if gamma is None:
        gamma = jnp.ones((n_out,), jnp.float32)
    if beta is None:
        beta = jnp.zeros((n_out,), jnp.float32)

    mm_dt = jnp.dtype(matmul_dtype)
    h_dt = jnp.dtype(h_dtype)

    # Lane-dense feature padding (multiples of 128); batch tiles multiple of 8.
    n_in_p = _round_up(n_in, 128)
    n_out_p = _round_up(n_out, 128)
    br1 = _round_up(max(8, min(block_rows, _round_up(n, 8))), 8)
    n_p = _round_up(n, br1)
    nt1 = n_p // br1
    # Pass-2 tile: largest power-of-two multiple of br1 dividing n_p, <= block_rows_bn.
    m = 1
    while (m * 2) * br1 <= block_rows_bn and nt1 % (m * 2) == 0:
        m *= 2
    br2 = m * br1
    nt2 = n_p // br2

    # --- wrapper-side prep: cast to MXU dtype, pad, one-time W transpose ------
    xp = x.astype(mm_dt)
    if xp.shape != (n_p, n_in_p):
        xp = jnp.pad(xp, ((0, n_p - n), (0, n_in_p - n_in)))
    wt = weight.astype(mm_dt).T                                  # (n_in, n_out)
    if wt.shape != (n_in_p, n_out_p):
        wt = jnp.pad(wt, ((0, n_in_p - n_in), (0, n_out_p - n_out)))

    def _vmem_limit(per_step_bytes):
        # double-buffered pipeline + headroom; stay under v7x's 64 MiB physical.
        return int(min(max(per_step_bytes + (16 << 20), 32 << 20), 60 << 20))

    p1_bytes = (2 * br1 * n_in_p * mm_dt.itemsize          # x tile (double buffer)
                + 2 * n_in_p * n_out_p * mm_dt.itemsize    # resident W (budget 2)
                + 2 * br1 * n_out_p * h_dt.itemsize        # h tile out
                + 2 * 2 * 8 * n_out_p * 4                  # partial stats out
                + 4 * br1 * n_out_p)                       # f32 matmul result
    p2_bytes = (2 * br2 * n_out_p * h_dt.itemsize
                + 2 * br2 * n_out_p * jnp.dtype(x.dtype).itemsize
                + 4 * 8 * n_out_p * 4)

    # ---- Pass 1: Linear (bf16 MXU, f32 acc) + per-tile partial stats ---------
    h, psum, psumsq = pl.pallas_call(
        _linear_stats_kernel,
        out_shape=(
            jax.ShapeDtypeStruct((n_p, n_out_p), h_dt),
            jax.ShapeDtypeStruct((nt1 * 8, n_out_p), jnp.float32),
            jax.ShapeDtypeStruct((nt1 * 8, n_out_p), jnp.float32),
        ),
        grid=(nt1,),
        in_specs=[
            pl.BlockSpec((br1, n_in_p), lambda i: (i, 0)),        # x tile
            pl.BlockSpec((n_in_p, n_out_p), lambda i: (0, 0)),    # W^T resident
        ],
        out_specs=(
            pl.BlockSpec((br1, n_out_p), lambda i: (i, 0)),       # h tile
            pl.BlockSpec((8, n_out_p), lambda i: (i, 0)),         # partial sum
            pl.BlockSpec((8, n_out_p), lambda i: (i, 0)),         # partial sumsq
        ),
        compiler_params=pltpu.CompilerParams(
            dimension_semantics=("parallel",),                    # megacore-friendly
            vmem_limit_bytes=_vmem_limit(p1_bytes)),
        cost_estimate=pl.CostEstimate(
            flops=int(2 * n_p * n_in_p * n_out_p + 3 * n_p * n_out_p),
            transcendentals=0,
            bytes_accessed=int(mm_dt.itemsize * (n_p * n_in_p + n_in_p * n_out_p)
                               + h_dt.itemsize * n_p * n_out_p
                               + 4 * 2 * nt1 * 8 * n_out_p)),
    )(xp, wt)

    # ---- Tiny cross-tile stats reduction + scale/shift fold (wrapper, O(n_out))
    inv_n = 1.0 / n
    s = jnp.sum(psum, axis=0, keepdims=True)                      # (1, n_out_p)
    ss = jnp.sum(psumsq, axis=0, keepdims=True)
    mean = s * inv_n
    var = jnp.maximum(ss * inv_n - mean * mean, 0.0)              # guard cancellation
    gp = jnp.pad(gamma.astype(jnp.float32).reshape(1, n_out),
                 ((0, 0), (0, n_out_p - n_out)))
    bp = jnp.pad(beta.astype(jnp.float32).reshape(1, n_out),
                 ((0, 0), (0, n_out_p - n_out)))
    scale = lax.rsqrt(var + eps) * gp                             # gamma folded
    shift = bp - mean * scale                                     # mean + beta folded

    # ---- Pass 2: fused mul-add-ReLU, mem-bound, larger batch tiles -----------
    yp = pl.pallas_call(
        _bn_relu_kernel,
        out_shape=jax.ShapeDtypeStruct((n_p, n_out_p), x.dtype),
        grid=(nt2,),
        in_specs=[
            pl.BlockSpec((br2, n_out_p), lambda i: (i, 0)),       # h tile
            pl.BlockSpec((1, n_out_p), lambda i: (0, 0)),         # scale
            pl.BlockSpec((1, n_out_p), lambda i: (0, 0)),         # shift
        ],
        out_specs=pl.BlockSpec((br2, n_out_p), lambda i: (i, 0)),
        compiler_params=pltpu.CompilerParams(
            dimension_semantics=("parallel",),
            vmem_limit_bytes=_vmem_limit(p2_bytes)),
        cost_estimate=pl.CostEstimate(
            flops=int(3 * n_p * n_out_p),
            transcendentals=0,
            bytes_accessed=int(h_dt.itemsize * n_p * n_out_p
                               + jnp.dtype(x.dtype).itemsize * n_p * n_out_p
                               + 4 * 2 * n_out_p)),
    )(h, scale, shift)

    if (n_p, n_out_p) != (n, n_out):
        yp = yp[:n, :n_out]
    return yp


def _reference(x, weight, bias, gamma, beta, eps=1e-5):
    h = x @ weight.T + bias
    mean = h.mean(axis=0, keepdims=True)
    var = ((h - mean) ** 2).mean(axis=0, keepdims=True)
    h = (h - mean) / jnp.sqrt(var + eps) * gamma + beta
    return jnp.maximum(h, 0.0)


if __name__ == "__main__":
    key = jax.random.PRNGKey(0)
    k_x, k_w, k_b, k_g, k_be = jax.random.split(key, 5)

    N, n_in, n_out = 8, 32, 16

    x = jax.random.normal(k_x, (N, n_in), dtype=jnp.float32)

    # nn.init.xavier_normal_ on Linear weight: std = sqrt(2 / (fan_in + fan_out))
    w_std = (2.0 / (n_in + n_out)) ** 0.5
    weight = jax.random.normal(k_w, (n_out, n_in), dtype=jnp.float32) * w_std
    # nn.Linear default bias init: U(-1/sqrt(fan_in), 1/sqrt(fan_in))
    bound = 1.0 / (n_in ** 0.5)
    bias = jax.random.uniform(k_b, (n_out,), jnp.float32, -bound, bound)
    # BatchNorm affine params (perturbed from default init to exercise the path)
    gamma = 1.0 + 0.1 * jax.random.normal(k_g, (n_out,), dtype=jnp.float32)
    beta = 0.1 * jax.random.normal(k_be, (n_out,), dtype=jnp.float32)

    y_ref = _reference(x, weight, bias, gamma, beta)

    # Default fast path: bf16 MXU inputs + bf16 h intermediate (f32 accumulation).
    y = autoencoder_encode(x, weight, bias, gamma, beta)
    jax.block_until_ready(y)
    assert y.shape == (N, n_out)
    assert jnp.allclose(y, y_ref, atol=5e-2, rtol=5e-2), \
        float(jnp.max(jnp.abs(y - y_ref)))

    # Exact f32 path: tight numerical validation of the kernel structure.
    y32 = autoencoder_encode(x, weight, bias, gamma, beta,
                             matmul_dtype=jnp.float32, h_dtype=jnp.float32)
    jax.block_until_ready(y32)
    assert jnp.allclose(y32, y_ref, atol=1e-4, rtol=1e-4), \
        float(jnp.max(jnp.abs(y32 - y_ref)))

    print("KERNEL_OK")
</pallas_src>

<mosaic_0001>
module attributes {stable_mosaic.version = 11 : i64} {
  func.func @_linear_stats_kernel(%arg0: i32, %arg1: memref<8x128xbf16, #tpu.memory_space<vmem>>, %arg2: memref<128x128xbf16, #tpu.memory_space<vmem>>, %arg3: memref<8x128xbf16, #tpu.memory_space<vmem>>, %arg4: memref<8x128xf32, #tpu.memory_space<vmem>>, %arg5: memref<8x128xf32, #tpu.memory_space<vmem>>) attributes {dimension_semantics = [#tpu.dimension_semantics<parallel>], iteration_bounds = array<i64: 1>, scalar_prefetch = 0 : i64, scratch_operands = 0 : i64, tpu.core_type = #tpu.core_type<tc>, window_params = [{transform_indices = @transform_0, window_bounds = array<i64: 8, 128>}, {pipeline_mode = #tpu.pipeline_mode<synchronous>, transform_indices = @transform_1, window_bounds = array<i64: 128, 128>}, {transform_indices = @transform_2, window_bounds = array<i64: 8, 128>}, {transform_indices = @transform_3, window_bounds = array<i64: 8, 128>}, {transform_indices = @transform_4, window_bounds = array<i64: 8, 128>}]} {
    %c0 = arith.constant 0 : index
    %c0_0 = arith.constant 0 : index
    %0 = vector.load %arg1[%c0, %c0_0] : memref<8x128xbf16, #tpu.memory_space<vmem>>, vector<8x128xbf16>
    %c0_1 = arith.constant 0 : index
    %c0_2 = arith.constant 0 : index
    %1 = vector.load %arg2[%c0_1, %c0_2] : memref<128x128xbf16, #tpu.memory_space<vmem>>, vector<128x128xbf16>
    %cst = arith.constant dense<0.000000e+00> : vector<8x128xf32>
    %2 = tpu.matmul %0, %1, %cst {dimension_numbers = #tpu.dot_dimension_numbers<[1], [0], [0], [1], [0, 0, 1, 1], [], []>} : vector<8x128xbf16>, vector<128x128xbf16>, vector<8x128xf32> -> vector<8x128xf32>
    %3 = arith.truncf %2 : vector<8x128xf32> to vector<8x128xbf16>
    %c0_3 = arith.constant 0 : index
    %c0_4 = arith.constant 0 : index
    %4 = vector.load %arg3[%c0_3, %c0_4] : memref<8x128xbf16, #tpu.memory_space<vmem>>, vector<8x128xbf16>
    tpu.vector_store %arg3[%c0_3, %c0_4], %3 {strides = array<i32>} : memref<8x128xbf16, #tpu.memory_space<vmem>>, vector<8x128xbf16>,
    %5 = vector.shape_cast %2 : vector<8x128xf32> to vector<1x8x128xf32>
    %cst_5 = arith.constant dense<0.000000e+00> : vector<8x128xf32>
    %6 = vector.multi_reduction <add>, %5, %cst_5 [0] : vector<1x8x128xf32> to vector<8x128xf32>
    %c0_6 = arith.constant 0 : index
    %c0_7 = arith.constant 0 : index
    %7 = vector.load %arg4[%c0_6, %c0_7] : memref<8x128xf32, #tpu.memory_space<vmem>>, vector<8x128xf32>
    tpu.vector_store %arg4[%c0_6, %c0_7], %6 {strides = array<i32>} : memref<8x128xf32, #tpu.memory_space<vmem>>, vector<8x128xf32>,
    %8 = arith.mulf %5, %5 : vector<1x8x128xf32>
    %cst_8 = arith.constant dense<0.000000e+00> : vector<8x128xf32>
    %9 = vector.multi_reduction <add>, %8, %cst_8 [0] : vector<1x8x128xf32> to vector<8x128xf32>
    %c0_9 = arith.constant 0 : index
    %c0_10 = arith.constant 0 : index
    %10 = vector.load %arg5[%c0_9, %c0_10] : memref<8x128xf32, #tpu.memory_space<vmem>>, vector<8x128xf32>
    tpu.vector_store %arg5[%c0_9, %c0_10], %9 {strides = array<i32>} : memref<8x128xf32, #tpu.memory_space<vmem>>, vector<8x128xf32>,
    return
  }
  func.func @transform_0(%arg0: i32) -> (i32, i32) {
    %c0_i32 = arith.constant 0 : i32
    %c0_i32_0 = arith.constant 0 : i32
    return %arg0, %c0_i32 : i32, i32
  }
  func.func @transform_1(%arg0: i32) -> (i32, i32) {
    %c0_i32 = arith.constant 0 : i32
    %c0_i32_0 = arith.constant 0 : i32
    %c0_i32_1 = arith.constant 0 : i32
    return %c0_i32, %c0_i32_0 : i32, i32
  }
  func.func @transform_2(%arg0: i32) -> (i32, i32) {
    %c0_i32 = arith.constant 0 : i32
    %c0_i32_0 = arith.constant 0 : i32
    return %arg0, %c0_i32 : i32, i32
  }
  func.func @transform_3(%arg0: i32) -> (i32, i32) {
    %c0_i32 = arith.constant 0 : i32
    %c0_i32_0 = arith.constant 0 : i32
    return %arg0, %c0_i32 : i32, i32
  }
  func.func @transform_4(%arg0: i32) -> (i32, i32) {
    %c0_i32 = arith.constant 0 : i32
    %c0_i32_0 = arith.constant 0 : i32
    return %arg0, %c0_i32 : i32, i32
  }
}

</mosaic_0001>

<bundles_post_ra>
// kernel: tpu_custom_call.1
= control target key start
LH: loop header
LB: loop body
LE: loop exit
PB: predicated region body
PF: predicated region fallthrough
CT: control target
= control target key end

     0   :  { %10 = vsyncpa [#allocation3], 0  ;;  %s409_s0 = inlined_call_operand.hbm [shape: bf16[8,128], index: 0, kind: input, shape index: {}]   ;;  %s410_s1 = inlined_call_operand.hbm [shape: bf16[128,128], index: 1, kind: input, shape index: {}]   ;;  %s411_s2 = inlined_call_operand.hbm [shape: bf16[8,128], index: 2, kind: output, shape index: {0}]   ;;  %s412_s3 = inlined_call_operand.hbm [shape: f32[8,128], index: 3, kind: output, shape index: {1}]   ;;  %s413_s4 = inlined_call_operand.hbm [shape: f32[8,128], index: 4, kind: output, shape index: {2}]  }
   0x1   :  { %11 = vsyncpa [#allocation6], 0 }
   0x2   :  { %12 = vsyncpa [#allocation4], 0 }
   0x3   :  { %13 = vsyncpa [#allocation9], 0  ;;  %s360_s15 = smov [#allocation2]   ;;  %s361_s17 = smov [#allocation5]  }
   0x4   :  { %s20_s16 = sshll.u32 %s360_s15, 4  ;;  %s29_s18 = sshll.u32 %s361_s17, 4  ;;  %s21_s16 = int_to_ptr.vmem [resolvable:$true] %s20_s16  ;;  %s30_s18 = int_to_ptr.vmem [resolvable:$true] %s29_s18 }
   0x5   :  { %s260_s19 = scalar_lea.vmem %s21_s16, 64  ;;  %p265_p1 = scmp.lt.s32.totalorder %s21_s16, %s21_s16 }
   0x6   :  { %p261_p0 = scmp.ne.s32.totalorder %s21_s16, %s260_s19  ;;  %p266_p2 = scmp.lt.s32.totalorder %s260_s19, %s260_s19 }
   0x8   :  { %p267_p3 = por %p266_p2, %p265_p1 }
   0xa   :  { %p268_p4 = pnand %p267_p3, %p261_p0 }
   0xc   :  { %271 = shalt.err (!%p268_p4)
}
   0xd   :  { %23 = dma.hbm_to_vmem [thread:$0]  %s409_s0, 64, %s21_s16, [#allocation3]  }
   0xe   :  { %s280_s22 = scalar_lea.vmem %s30_s18, 1024  ;;  %p285_p6 = scmp.lt.s32.totalorder %s30_s18, %s30_s18 }
   0xf   :  { %p281_p5 = scmp.ne.s32.totalorder %s30_s18, %s280_s22  ;;  %p286_p7 = scmp.lt.s32.totalorder %s280_s22, %s280_s22 }
  0x11   :  { %p287_p8 = por %p286_p7, %p285_p6 }
  0x13   :  { %p288_p9 = pnand %p287_p8, %p281_p5 }
  0x15   :  { %291 = shalt.err (!%p288_p9)
}
  0x16   :  { %s362_s23 = smov 64   ;;  %s363_s24 = smov 4  }
  0x17   :  { %35 = dma.hbm_to_vmem [thread:$0]  %s410_s1, 1024, %s30_s18, [#allocation6], %s362_s23, %s362_s23, %s363_s24  }
  0x18   :  { %352 = dma.done.wait [#allocation3], 64  }
  0x19   :  { %353 = vsyncadd [#allocation3], 4294967232 }
  0x1a   :  { %354 = dma.done.wait [#allocation6], 1024  }
  0x1b   :  { %355 = vsyncadd [#allocation6], 4294966272  ;;  %v364_v0 = vmov 0.0   ;;  %vm365_vm0 = vmmov 0   ;;  %v244_v1 = vld [vmem:[#allocation5 + $0x38] sm:$0xff]   ;;  %v245_v2 = vld [vmem:[#allocation5 + $0x30] sm:$0xff]  }
  0x1c   :  { %215 = vmatprep.subr.bf16.mxu0 %v364_v0  ;;  %231 = vmatprep.mubr.msk.bf16.mxu0 %vm365_vm0, %v364_v0  ;;  %v246_v3 = vld [vmem:[#allocation5 + $0x28] sm:$0xff]   ;;  %v247_v4 = vld [vmem:[#allocation5 + $0x20] sm:$0xff]   ;;  %v248_v5 = vld [vmem:[#allocation5 + $0x18] sm:$0xff]   ;;  %s366_s0 = smov [#allocation8]   ;;  %s367_s27 = smov [#allocation7]  }
  0x1d   :  { %216 = vmatpush3.bf16.msra.mxu0 %v244_v1  ;;  %v249_v6 = vld [vmem:[#allocation5 + $0x10] sm:$0xff]   ;;  %v250_v7 = vld [vmem:[#allocation5 + $0x8] sm:$0xff]   ;;  %v251_v8 = vld [vmem:[#allocation5] sm:$0xff]   ;;  %s171_s1 = sshll.u32 %s366_s0, 4  ;;  %s161_s28 = sshll.u32 %s367_s27, 4  ;;  %s172_s1 = int_to_ptr.vmem [resolvable:$true] %s171_s1  ;;  %s162_s28 = int_to_ptr.vmem [resolvable:$true] %s161_s28 }
  0x1e   :  { %217 = vmatprep.subr.bf16.mxu0 %v364_v0  ;;  %v43_v9 = vld [vmem:[#allocation2] sm:$0xf]  ;;  %s368_s29 = smov [#allocation10]   ;;  %s292_s5 = scalar_lea.vmem %s172_s1, 128 }
  0x1f   :  { %s181_s30 = sshll.u32 %s368_s29, 4  ;;  %p293_p10 = scmp.ne.s32.totalorder %s172_s1, %s292_s5  ;;  %s182_s30 = int_to_ptr.vmem [resolvable:$true] %s181_s30 }
  0x20   :  { %p297_p11 = scmp.lt.s32.totalorder %s172_s1, %s172_s1  ;;  %p298_p12 = scmp.lt.s32.totalorder %s292_s5, %s292_s5 }
  0x21   :  { %218 = vmatpush3.bf16.msra.mxu0 %v245_v2 }
  0x22   :  { %219 = vmatprep.subr.bf16.mxu0 %v364_v0  ;;  %p299_p13 = por %p298_p12, %p297_p11 }
  0x24   :  { %p300_p0 = pnand %p299_p13, %p293_p10 }
  0x25   :  { %220 = vmatpush3.bf16.msra.mxu0 %v246_v3 }
  0x26   :  { %221 = vmatprep.subr.bf16.mxu0 %v364_v0 }
  0x29   :  { %222 = vmatpush3.bf16.msra.mxu0 %v247_v4 }
  0x2a   :  { %223 = vmatprep.subr.bf16.mxu0 %v364_v0 }
  0x2d   :  { %224 = vmatpush3.bf16.msra.mxu0 %v248_v5 }
  0x2e   :  { %225 = vmatprep.subr.bf16.mxu0 %v364_v0 }
  0x31   :  { %226 = vmatpush3.bf16.msra.mxu0 %v249_v6 }
  0x32   :  { %227 = vmatprep.subr.bf16.mxu0 %v364_v0 }
  0x35   :  { %228 = vmatpush3.bf16.msra.mxu0 %v250_v7 }
  0x36   :  { %229 = vmatprep.subr.bf16.mxu0 %v364_v0 }
  0x39   :  { %230 = vmatpush3.bf16.msra.mxu0 %v251_v8 }
  0x3c   :  { %232 = vmatmul.mubr.bf16.vlgmr.msra.gmra.mxu0 %v43_v9 }
  0xfc   :  { %v142_v10 = vpop.f32.mrf.mxu0 }
  0xfd   :  { %v148_v11 = vpack.c.bf16 %v142_v10, %v142_v10  ;;  %v152_v12 = vmul.f32 %v142_v10, %v142_v10  ;;  %151 = vst [vmem:[#allocation8] sm:$0xff] %v142_v10 }
  0xfe   :  { %v233_v13 = vpop.f32.mrf.mxu0 }
  0xff   :  { %303 = shalt.err (!%p300_p0)
}
 0x100   :  { %174 = dma.vmem_to_hbm [thread:$0]  %s172_s1, 128, %s412_s3, [#allocation9]   ;;  %149 = vst [vmem:[#allocation7] sm:$0xf] %v148_v11  ;;  %154 = vst [vmem:[#allocation10] sm:$0xff] %v152_v12  ;;  %v145_v14 = vpop.f32.mrf.mxu0 }
 0x101   :  { %s312_s8 = scalar_lea.vmem %s162_s28, 64  ;;  %p317_p2 = scmp.lt.s32.totalorder %s162_s28, %s162_s28 }
 0x102   :  { %p313_p1 = scmp.ne.s32.totalorder %s162_s28, %s312_s8  ;;  %p318_p3 = scmp.lt.s32.totalorder %s312_s8, %s312_s8 }
 0x104   :  { %p319_p4 = por %p318_p3, %p317_p2 }
 0x106   :  { %p320_p5 = pnand %p319_p4, %p313_p1 }
 0x108   :  { %323 = shalt.err (!%p320_p5)
}
 0x109   :  { %164 = dma.vmem_to_hbm [thread:$0]  %s162_s28, 64, %s411_s2, [#allocation4]  }
 0x10a   :  { %s332_s11 = scalar_lea.vmem %s182_s30, 128  ;;  %p337_p7 = scmp.lt.s32.totalorder %s182_s30, %s182_s30 }
 0x10b   :  { %p333_p6 = scmp.ne.s32.totalorder %s182_s30, %s332_s11  ;;  %p338_p8 = scmp.lt.s32.totalorder %s332_s11, %s332_s11 }
 0x10d   :  { %p339_p9 = por %p338_p8, %p337_p7 }
 0x10f   :  { %p340_p10 = pnand %p339_p9, %p333_p6 }
 0x111   :  { %343 = shalt.err (!%p340_p10)
}
 0x112   :  { %184 = dma.vmem_to_hbm [thread:$0]  %s182_s30, 128, %s413_s4, [#allocation9]   ;;  %v234_v15 = vpop.f32.mrf.mxu0 }
 0x113   :  { %356 = dma.done.wait [#allocation4], 64  }
 0x114   :  { %357 = vsyncadd [#allocation4], 4294967232 }
 0x115   :  { %358 = dma.done.wait [#allocation9], 256  }
 0x116   :  { %359 = vsyncadd [#allocation9], 4294967040 }
 0x117   :  { %194 = vsyncpa [#allocation3], 1 }
 0x118   :  { %195 = vsyncpa [#allocation6], 1 }
 0x119   :  { %196 = vsyncpa [#allocation4], 1 }
 0x11a   :  { %197 = vsyncpa [#allocation9], 1 }

</bundles_post_ra>
